<compile_context>
chip_gen: v7x
topology: tpu7x:2x2x1
jax: 0.10.0
libtpu: 0.0.40
codegen_flags: <defaults>
</compile_context>

<pallas_src>
import jax
import jax.numpy as jnp
from jax.experimental import pallas as pl
from jax.experimental.pallas import tpu as pltpu


def make_positional_embedding(input_dim: int = 144, max_len: int = 5000):
    """Builds the (max_len, input_dim) sinusoidal table exactly like the
    PyTorch __init__ (even columns sin, odd columns cos)."""
    assert input_dim % 2 == 0, "input_dim must be even (matches PyTorch module)"
    half = jnp.arange(0, input_dim, 2, dtype=jnp.float32)
    inv_freq = 1.0 / (10000.0 ** (half / input_dim))             # (C//2,)
    pos = jnp.arange(0, max_len, dtype=jnp.float32)[:, None]     # (max_len, 1)
    ang = pos * inv_freq[None, :]                                 # (max_len, C//2)
    emb = jnp.zeros((max_len, input_dim), dtype=jnp.float32)
    emb = emb.at[:, 0::2].set(jnp.sin(ang))
    emb = emb.at[:, 1::2].set(jnp.cos(ang))
    return emb


def _add_pe_kernel(x_ref, pe_ref, o_ref):
    # x_ref / o_ref: (tt, C) tile of one batch element (batch dim squeezed);
    # pe_ref: matching (tt, C) tile of the positional table.
    o_ref[...] = x_ref[...] + pe_ref[...].astype(x_ref.dtype)


def _pick_time_tile(T: int, cap: int = 1024) -> int:
    """Largest divisor of T that is a multiple of 8 (sublane-aligned) and
    <= cap; falls back to the full T, which is always a legal block size."""
    for tt in range(min(T, cap), 0, -1):
        if T % tt == 0 and tt % 8 == 0:
            return tt
    return T


def positional_encoding(x, embedding):
    """x: (B, T, C);  embedding: (max_len, C) with max_len >= T."""
    B, T, C = x.shape
    assert embedding.shape[0] >= T and embedding.shape[1] == C
    pe = embedding[:T, :]

    tt = _pick_time_tile(T)
    grid = (B, T // tt)

    cost = pl.CostEstimate(
        flops=B * T * C,
        transcendentals=0,
        bytes_accessed=(2 * B * T * C + T * C) * x.dtype.itemsize,
    )

    return pl.pallas_call(
        _add_pe_kernel,
        out_shape=jax.ShapeDtypeStruct((B, T, C), x.dtype),
        grid_spec=pltpu.PrefetchScalarGridSpec(
            num_scalar_prefetch=0,
            grid=grid,
            in_specs=[
                # x: batch dim squeezed out; lane-dense (tt, C) tile.
                pl.BlockSpec((None, tt, C), lambda b, t: (b, t, 0)),
                # pe: broadcast over batch (index_map ignores b).
                pl.BlockSpec((tt, C), lambda b, t: (t, 0)),
            ],
            out_specs=pl.BlockSpec((None, tt, C), lambda b, t: (b, t, 0)),
        ),
        compiler_params=pltpu.CompilerParams(
            dimension_semantics=("parallel", "parallel"),
            vmem_limit_bytes=32 * 1024 * 1024,
        ),
        cost_estimate=cost,
    )(x, pe)


def reference(x, embedding):
    T = x.shape[1]
    return x + embedding[:T, :][None, :, :]


if __name__ == "__main__":
    # Small shapes consistent with the module (input_dim defaults to 144).
    B, T, C = 2, 16, 144
    MAX_LEN = 64

    key = jax.random.PRNGKey(0)
    x = jax.random.normal(key, (B, T, C), dtype=jnp.float32)
    emb = make_positional_embedding(input_dim=C, max_len=MAX_LEN)

    out = jax.block_until_ready(positional_encoding(x, emb))
    ref = reference(x, emb)

    assert out.shape == (B, T, C)
    assert jnp.allclose(out, ref, atol=1e-6, rtol=1e-6), "mismatch vs reference"

    print("KERNEL_OK")
</pallas_src>

<mosaic_0001>
module attributes {stable_mosaic.version = 11 : i64} {
  func.func @_add_pe_kernel(%arg0: i32, %arg1: i32, %arg2: memref<1x16x144xf32, #tpu.memory_space<vmem>>, %arg3: memref<16x144xf32, #tpu.memory_space<vmem>>, %arg4: memref<1x16x144xf32, #tpu.memory_space<vmem>>) attributes {dimension_semantics = [#tpu.dimension_semantics<parallel>, #tpu.dimension_semantics<parallel>], iteration_bounds = array<i64: 2, 1>, scalar_prefetch = 0 : i64, scratch_operands = 0 : i64, tpu.core_type = #tpu.core_type<tc>, window_params = [{transform_indices = @transform_0, window_bounds = array<i64: 1, 16, 144>}, {transform_indices = @transform_1, window_bounds = array<i64: 16, 144>}, {transform_indices = @transform_2, window_bounds = array<i64: 1, 16, 144>}]} {
    %c0 = arith.constant 0 : index
    %c0_0 = arith.constant 0 : index
    %c0_1 = arith.constant 0 : index
    %0 = vector.load %arg2[%c0, %c0_0, %c0_1] : memref<1x16x144xf32, #tpu.memory_space<vmem>>, vector<1x16x144xf32>
    %1 = vector.shape_cast %0 : vector<1x16x144xf32> to vector<16x144xf32>
    %c0_2 = arith.constant 0 : index
    %c0_3 = arith.constant 0 : index
    %2 = vector.load %arg3[%c0_2, %c0_3] : memref<16x144xf32, #tpu.memory_space<vmem>>, vector<16x144xf32>
    %3 = arith.addf %1, %2 : vector<16x144xf32>
    %c0_4 = arith.constant 0 : index
    %c0_5 = arith.constant 0 : index
    %c0_6 = arith.constant 0 : index
    %4 = vector.load %arg4[%c0_4, %c0_5, %c0_6] : memref<1x16x144xf32, #tpu.memory_space<vmem>>, vector<1x16x144xf32>
    %5 = vector.shape_cast %4 : vector<1x16x144xf32> to vector<16x144xf32>
    %6 = vector.shape_cast %3 : vector<16x144xf32> to vector<1x16x144xf32>
    tpu.vector_store %arg4[%c0_4, %c0_5, %c0_6], %6 {strides = array<i32>} : memref<1x16x144xf32, #tpu.memory_space<vmem>>, vector<1x16x144xf32>,
    return
  }
  func.func @transform_0(%arg0: i32, %arg1: i32) -> (i32, i32, i32) {
    %c0_i32 = arith.constant 0 : i32
    %c0_i32_0 = arith.constant 0 : i32
    return %arg0, %arg1, %c0_i32 : i32, i32, i32
  }
  func.func @transform_1(%arg0: i32, %arg1: i32) -> (i32, i32) {
    %c0_i32 = arith.constant 0 : i32
    %c0_i32_0 = arith.constant 0 : i32
    return %arg1, %c0_i32 : i32, i32
  }
  func.func @transform_2(%arg0: i32, %arg1: i32) -> (i32, i32, i32) {
    %c0_i32 = arith.constant 0 : i32
    %c0_i32_0 = arith.constant 0 : i32
    return %arg0, %arg1, %c0_i32 : i32, i32, i32
  }
}

</mosaic_0001>

<bundles_post_ra>
// kernel: tpu_custom_call.1
= control target key start
LH: loop header
LB: loop body
LE: loop exit
PB: predicated region body
PF: predicated region fallthrough
CT: control target
= control target key end

     0   :  { %7 = vsyncpa [#allocation3], 0  ;;  %s830_s0 = inlined_call_operand.hbm [shape: f32[2,16,144], index: 0, kind: input, shape index: {}]   ;;  %s831_s1 = inlined_call_operand.hbm [shape: f32[16,144], index: 1, kind: input, shape index: {}]   ;;  %s832_s2 = inlined_call_operand.hbm [shape: f32[2,16,144], index: 2, kind: output, shape index: {}]  }
   0x1   :  { %9 = vsyncpa [#allocation3 + $0x1], 0 }
   0x2   :  { %10 = vsyncpa [#allocation6], 0 }
   0x3   :  { %11 = vsyncpa [#allocation4], 0 }
   0x4   :  { %13 = vsyncpa [#allocation4 + $0x1], 0  ;;  %s605_s9 = smov 0   ;;  %s607_s10 = smov 0  }
   0x5   :  { %s609_s11 = smov 0   ;;  %s611_s12 = smov 0  }
   0x6   :  { %s613_s13 = smov 0   ;;  %s615_s14 = smov 0  }
   0x7 LB: > { %s341_s15 = sadd.s32 4294967295, %s581_s14   ;;  %s342_s16 = sadd.s32 4294967294, %s581_s14   ;;  %s581_s14 = sphi %s615_s14, %s19_s14   ;;  %s577_s13 = sphi %s613_s13, %s856_s13   ;;  %s573_s12 = sphi %s611_s12, %s855_s12   ;;  %s569_s11 = sphi %s609_s11, %s854_s11   ;;  %s565_s10 = sphi %s607_s10, %s853_s10   ;;  %s561_s9 = sphi %s605_s9, %s852_s9  }
   0x8   : > { %p53_p0 = scmp.ne.s32.totalorder %s565_s10, %s561_s9  ;;  %p639_p1 = scmp.eq.s32.totalorder %s341_s15, 0 }
   0x9   : > { %p643_p2 = scmp.eq.s32.totalorder %s341_s15, 1  ;;  %p111_p3 = scmp.eq.s32.totalorder %s342_s16, 1 }
   0xa   : > { %s837_s17 = scalar_select %p639_p1, 1, 0 }
   0xb   : > { %s838_s18 = scalar_select %p643_p2, 1, 0 }
   0xc   : > { %p649_p4 = por %p639_p1, %p53_p0  ;;  %p343_p5 = scmp.ge.s32.totalorder %s581_s14, 1 }
   0xd   : > { %p654_p6 = por %p111_p3, %p53_p0  ;;  %p118_p7 = scmp.lt.s32.totalorder %s581_s14, 3 }
   0xe   : > { %s839_s19 = scalar_select %p649_p4, 1, 0 }
   0xf   : > { %s840_s20 = scalar_select %p654_p6, 1, 0 }
  0x10   : > { %p659_p8 = pnand %p343_p5, %p118_p7  ;;  %s583_s22 = smov [#allocation5]  }
  0x11   : > { %s134_s23 = sshll.u32 %s583_s22, 4  ;;  %s31_s25 = sadd.s32 1, %s577_s13  ;;  %s135_s23 = int_to_ptr.vmem [resolvable:$true] %s134_s23 }
  0x12   : > { %s841_s21 = scalar_select %p659_p8, 1, 0 }
  0x13   : > { %p368_p9 = pneg %p659_p8  ;;  %s437_s28 = scalar_lea.hbm %s831_s1, 512 }
  0x14   : > { %p438_p12 = scmp.ne.s32.totalorder %s831_s1, %s437_s28  ;;  %p444_p5 = scmp.lt.u32.totalorder %s437_s28, %s831_s1 }
  0x15   : > { %p668_p11 = pnand %p368_p9, %p639_p1 }
  0x17   : > { %p439_p13 = pneg %p668_p11 }
  0x19   : > { %p440_p0 = pnand %p439_p13, %p438_p12 }
  0x1b   : > { %p441_p3 = pneg %p440_p0 }
  0x1d   : > { %p446_p7 = pnand %p444_p5, %p441_p3 }
  0x1f   : > { %449 = shalt.err (!%p446_p7)
}
  0x20   : > { %s450_s5 = scalar_lea.vmem %s135_s23, 512  ;;  %p458_p1 = scmp.lt.s32.totalorder %s135_s23, %s135_s23 }
  0x21   : > { %p451_p9 = scmp.ne.s32.totalorder %s135_s23, %s450_s5  ;;  %p459_p4 = scmp.lt.s32.totalorder %s450_s5, %s450_s5 }
  0x23   : > { %p453_p10 = pnand %p451_p9, %p439_p13  ;;  %p460_p8 = por %p459_p4, %p458_p1 }
  0x25   : > { %p454_p6 = pneg %p453_p10 }
  0x27   : > { %p461_p2 = pnand %p460_p8, %p454_p6 }
  0x29   : > { %464 = shalt.err (!%p461_p2)
}
  0x2a   : > { %s584_s6 = smov 256   ;;  %s585_s7 = smov 16  }
  0x2b   : > { %371 = dma.hbm_to_vmem [thread:$0]  (!%p668_p11), %s831_s1, 512, %s135_s23, [#allocation6], %s584_s6, %s584_s6, %s585_s7  }
  0x2c   : > { %p33_p1 = scmp.ge.s32.totalorder %s31_s25, 2  ;;  %s40_s16 = sadd.s32 1, %s569_s11 }
  0x2d   : > { %p47_p2 = scmp.ne.s32.totalorder %s569_s11, %s565_s10  ;;  %p48_p4 = scmp.eq.s32.totalorder %s581_s14, 0 }
  0x2e   : > { %s858_s25 = smov (%p33_p1, %s31_s25), 0  ;;  %p844_p8 = scmp.ne.s32.totalorder %s838_s18, 0 }
  0x2f   : > { %p698_p6 = por %p48_p4, %p47_p2  ;;  %s35_s26 = ssub.s32 %s577_s13, %s858_s25 }
  0x30   : > { %p704_p10 = por %p844_p8, %p47_p2  ;;  %p381_p12 = scmp.lt.s32.totalorder %s581_s14, 2 }
  0x31   : > { %p38_p11 = scmp.eq.s32.totalorder %s35_s26, 0  ;;  %s148_s23 = sand.u32 1, %s569_s11  }
  0x32   : > { %s346_s27 = sshll.u32 %s148_s23, 5  ;;  %s358_s29 = sshll.u32 %s577_s13, 9 }
  0x33   : > { %s713_s28 = scalar_select %p38_p11, %s569_s11, %s40_s16  }
  0x34   : > { %s719_s4 = scalar_lea.hbm %s830_s0, %s358_s29  ;;  %s152_s18 = scalar_lea.vmem [#allocation2], %s346_s27 }
  0x35   : > { %s162_s5 = sshll.u32 %s152_s18, 4  ;;  %p725_p13 = pnand %p381_p12, %p698_p6  ;;  %s721_s5 = int_to_ptr.vmem [resolvable:$true] %s162_s5 }
  0x36   : > { %s729_s15 = scalar_lea.sflag [#allocation3], %s148_s23  ;;  %s465_s16 = scalar_lea.hbm %s719_s4, 512 }
  0x37   : > { %p466_p0 = scmp.ne.s32.totalorder %s719_s4, %s465_s16  ;;  %p467_p3 = pneg %p725_p13 }
  0x38   : > { %s470_s22 = scalar_lea.hbm %s830_s0, 1024  ;;  %p471_p9 = scmp.lt.u32.totalorder %s719_s4, %s830_s0 }
  0x39   : > { %p468_p5 = pnand %p467_p3, %p466_p0  ;;  %p472_p1 = scmp.lt.u32.totalorder %s470_s22, %s465_s16 }
  0x3a   : > { %p474_p4 = scmp.lt.u32.totalorder %s465_s16, %s719_s4 }
  0x3b   : > { %p469_p7 = pneg %p468_p5  ;;  %p473_p2 = por %p472_p1, %p471_p9 }
  0x3d   : > { %p475_p6 = por %p474_p4, %p473_p2 }
  0x3f   : > { %p476_p8 = pnand %p475_p6, %p469_p7 }
  0x41   : > { %479 = shalt.err (!%p476_p8)
}
  0x42   : > { %s480_s23 = scalar_lea.vmem %s721_s5, 512  ;;  %s586_s3 = smov [#allocation2]  }
  0x43   : > { %p481_p12 = scmp.ne.s32.totalorder %s721_s5, %s480_s23  ;;  %s485_s18 = sshll.u32 %s586_s3, 4  ;;  %s486_s18 = int_to_ptr.vmem [resolvable:$false] %s485_s18 }
  0x44   : > { %s487_s26 = scalar_lea.vmem %s486_s18, 1024  ;;  %p488_p5 = scmp.lt.s32.totalorder %s721_s5, %s486_s18 }
  0x45   : > { %p483_p11 = pnand %p481_p12, %p467_p3  ;;  %p489_p9 = scmp.lt.s32.totalorder %s487_s26, %s480_s23 }
  0x47   : > { %p484_p0 = pneg %p483_p11  ;;  %p490_p1 = por %p489_p9, %p488_p5 }
  0x49   : > { %p491_p2 = pnand %p490_p1, %p484_p0 }
  0x4b   : > { %494 = shalt.err (!%p491_p2)
}
  0x4c   : > { %375 = dma.hbm_to_vmem [thread:$0]  (!%p725_p13), %s719_s4, 512, %s721_s5, %s729_s15, %s584_s6, %s584_s6, %s585_s7  }
  0x4d   : > { %p847_p3 = scmp.ne.s32.totalorder %s841_s21, 0 }
  0x4e   : > { %s763_s16 = sand.u32 (!%p847_p3), 1, %s565_s10   ;;  %p848_p7 = scmp.ne.s32.totalorder (!%p847_p3), %s839_s19, 0 }
  0x4f   : > { %174 = sbr.rel (%p847_p3) target bundleno = 116 (0x74), region = 28  ;;  %s350_s27 = sshll.u32 (!%p847_p3), %s763_s16, 5 }
  0x50   : > { %s177_s22 = scalar_lea.sflag (!%p847_p3), [#allocation3], %s763_s16  ;;  %s180_s29 = scalar_lea.vmem (!%p847_p3), [#allocation2], %s350_s27 }
  0x56   : > { %548 = dma.done.wait (%p848_p7), %s177_s22, 512  }
  0x57   : > { %550 = vsyncadd (%p848_p7), %s177_s22, 4294966784  ;;  %p849_p4 = scmp.ne.s32.totalorder %s837_s17, 0 }
  0x59   : > { %552 = dma.done.wait (%p849_p4), [#allocation6], 512  }
  0x5a   : > { %554 = vsyncadd (%p849_p4), [#allocation6], 4294966784  ;;  %s204_s21 = scalar_lea.vmem [#allocation7], %s350_s27  ;;  %s359_s7 = sshll.u32 %s573_s12, 9  ;;  %v208_v0 = vld [vmem:[%s180_s29] sm:$0xff]  ;;  %v209_v2 = vld [vmem:[%s180_s29 + $0x8] sm:$0xff] }
  0x5b   : > { %s242_s6 = sshll.u32 %s204_s21, 4  ;;  %v212_v1 = vld [vmem:[#allocation5] sm:$0xff]  ;;  %v213_v4 = vld [vmem:[#allocation5 + $0x8] sm:$0xff]  ;;  %vm221_vm0 = vcmask 130048   ;;  %v210_v5 = vld [vmem:[%s180_s29 + $0x10] sm:$0xff]  ;;  %s781_s19 = scalar_lea.hbm %s832_s2, %s359_s7  ;;  %s776_s6 = int_to_ptr.vmem [resolvable:$true] %s242_s6 }
  0x5c   : > { %v216_v3 = vadd.f32 %v212_v1, %v208_v0  ;;  %v214_v6 = vld [vmem:[#allocation5 + $0x10] sm:$0xff]  ;;  %v217_v7 = vadd.f32 %v213_v4, %v209_v2  ;;  %v211_v9 = vld [vmem:[%s180_s29 + $0x18] sm:$0xff]  ;;  %s226_s4 = scalar_lea.sflag [#allocation4], %s763_s16  ;;  %s495_s5 = scalar_lea.vmem %s776_s6, 512 }
  0x5d   : > { %v218_v8 = vadd.f32 %v214_v6, %v210_v5  ;;  %v215_v10 = vld [vmem:[#allocation5 + $0x18] sm:$0xff]  ;;  %p496_p13 = scmp.ne.s32.totalorder %s776_s6, %s495_s5  ;;  %s587_s8 = smov [#allocation7]  }
  0x5e   : > { %220 = vst [vmem:[%s204_s21] sm:$0xff] %v216_v3  ;;  %v219_v11 = vadd.f32 %v215_v10, %v211_v9  ;;  %222 = vst.msk [vmem:[%s204_s21 + $0x8] sm:$0xff] %vm221_vm0, %v217_v7  ;;  %s499_s15 = sshll.u32 %s587_s8, 4  ;;  %s500_s15 = int_to_ptr.vmem [resolvable:$false] %s499_s15 }
  0x5f   : > { %223 = vst [vmem:[%s204_s21 + $0x10] sm:$0xff] %v218_v8  ;;  %p497_p6 = pnand %p496_p13, %p704_p10  ;;  %s501_s30 = scalar_lea.vmem %s500_s15, 1024 }
  0x60   : > { %224 = vst.msk [vmem:[%s204_s21 + $0x18] sm:$0xff] %vm221_vm0, %v219_v11  ;;  %p502_p12 = scmp.lt.s32.totalorder %s776_s6, %s500_s15  ;;  %p503_p11 = scmp.lt.s32.totalorder %s501_s30, %s495_s5 }
  0x61   : > { %p498_p8 = pneg %p497_p6 }
  0x62   : > { %p504_p0 = por %p503_p11, %p502_p12 }
  0x64   : > { %p505_p5 = pnand %p504_p0, %p498_p8 }
  0x66   : > { %508 = shalt.err (!%p505_p5)
}
  0x67   : > { %s509_s23 = scalar_lea.hbm %s781_s19, 512  ;;  %s513_s26 = scalar_lea.hbm %s832_s2, 1024 }
  0x68   : > { %p510_p9 = scmp.ne.s32.totalorder %s781_s19, %s509_s23  ;;  %p514_p3 = scmp.lt.u32.totalorder %s781_s19, %s832_s2 }
  0x69   : > { %p515_p7 = scmp.lt.u32.totalorder %s513_s26, %s509_s23  ;;  %p517_p13 = scmp.lt.u32.totalorder %s509_s23, %s781_s19 }
  0x6a   : > { %p511_p1 = pnand %p510_p9, %p704_p10 }
  0x6b   : > { %p516_p4 = por %p515_p7, %p514_p3 }
  0x6c   : > { %p512_p2 = pneg %p511_p1 }
  0x6d   : > { %p518_p6 = por %p517_p13, %p516_p4 }
  0x6f   : > { %p519_p8 = pnand %p518_p6, %p512_p2 }
  0x71   : > { %522 = shalt.err (!%p519_p8)
}
  0x72   : > { %s588_s29 = smov 256   ;;  %s589_s21 = smov 16  }
  0x73   : > { %366 = dma.vmem_to_hbm [thread:$0]  (%p704_p10), %s776_s6, 512, %s781_s19, %s226_s4, %s588_s29, %s588_s29, %s589_s21  }
  0x74 PF: > { %s257_s7 = sand.u32 1, %s561_s9   ;;  %p850_p12 = scmp.ne.s32.totalorder %s840_s20, 0 }
  0x75   : > { %p851_p11 = scmp.ge.s32.totalorder %s581_s14, 2  ;;  %s258_s17 = scalar_lea.sflag [#allocation4], %s257_s7 }
  0x77   : > { %p377_p0 = pnand %p851_p11, %p850_p12 }
  0x79   : > { %556 = dma.done.wait (!%p377_p0), %s258_s17, 512  }
  0x7a   : > { %558 = vsyncadd (!%p377_p0), %s258_s17, 4294966784  ;;  %s19_s14 = sadd.s32 1, %s581_s14   ;;  %s852_s9 = smov %s565_s10 }
  0x7b   : > { %p16_p5 = scmp.ge.s32.totalorder %s19_s14, 4   ;;  %s853_s10 = smov %s569_s11 }
  0x7c   : > { %s854_s11 = smov %s713_s28  ;;  %s855_s12 = smov %s577_s13 }
  0x7d   : > { %s856_s13 = smov %s858_s25  ;;  %18 = sbr.rel (!%p16_p5) target bundleno = 7 (0x7), region = 78 }
  0x84   :  { %263 = vsyncpa [#allocation3], 1 }
  0x85   :  { %265 = vsyncpa [#allocation3 + $0x1], 1 }
  0x86   :  { %266 = vsyncpa [#allocation6], 1 }
  0x87   :  { %267 = vsyncpa [#allocation4], 1 }
  0x88   :  { %269 = vsyncpa [#allocation4 + $0x1], 1 }

</bundles_post_ra>
